<compile_context>
chip_gen: v6e
topology: v6e:2x2x1
jax: 0.10.0
libtpu: 0.0.40
codegen_flags: <defaults>
</compile_context>

<pallas_src>
import functools

import jax
import jax.numpy as jnp
from jax.experimental import pallas as pl
from jax.experimental.pallas import tpu as pltpu


def _fused_merge_ln_linear_kernel(x_ref, wa_ref, wb_ref, gsum_ref, bias_ref,
                                  o_ref, *, eps, inv_nc):
    # x_ref   : (t_bi, 2, Wh, 2C)  both source-row parities of the 2x2 patches
    # wa_ref  : (2C, C2P)          gamma-folded weights, even-row stream [q0|q2]
    # wb_ref  : (2C, C2P)          gamma-folded weights, odd-row  stream [q1|q3]
    # gsum_ref: (1, C2P)           gamma @ W^T   (f32)
    # bias_ref: (1, C2P)           beta  @ W^T   (f32)
    # o_ref   : (t_bi, Wh, C2P)
    t_bi, _, wh, c2 = x_ref.shape
    rows = t_bi * wh

    x = x_ref[...]
    a = x[:, 0].reshape(rows, c2)       # merged-token channels [q0 | q2]
    b = x[:, 1].reshape(rows, c2)       # merged-token channels [q1 | q3]

    # ---- LayerNorm statistics over the merged 4C channels (f32, one pass) ----
    af = a.astype(jnp.float32)
    bf = b.astype(jnp.float32)
    s = jnp.sum(af, axis=-1, keepdims=True) + jnp.sum(bf, axis=-1, keepdims=True)
    ss = (jnp.sum(af * af, axis=-1, keepdims=True)
          + jnp.sum(bf * bf, axis=-1, keepdims=True))
    mean = s * inv_nc
    var = ss * inv_nc - mean * mean
    inv_std = jax.lax.rsqrt(var + eps)

    # ---- x @ (diag(gamma) @ W^T), split across the two row streams (MXU) ----
    z = jnp.dot(a, wa_ref[...], preferred_element_type=jnp.float32)
    z = z + jnp.dot(b, wb_ref[...], preferred_element_type=jnp.float32)

    # ---- LN folded into the epilogue ----------------------------------------
    out = inv_std * (z - mean * gsum_ref[...]) + bias_ref[...]
    o_ref[...] = out.reshape(t_bi, wh, -1).astype(o_ref.dtype)


def _choose_row_tile(n_bi, wh, c4, c2p, itemsize,
                     target_rows=2048, vmem_budget_bytes=24 * 1024 * 1024):
    """Pick how many source-row groups (each = Wh merged tokens) fit one step."""
    # double-buffered per-token-row bytes: input (4C) + output (c2p)
    per_row = 2 * (c4 + c2p) * itemsize
    # the two (2C, c2p) weight tiles are (conservatively) double-buffered too
    weight_bytes = 2 * 2 * (c4 // 2) * c2p * itemsize
    avail = max(vmem_budget_bytes - weight_bytes, per_row * wh)
    max_rows = max(wh, avail // per_row)
    rows = int(min(target_rows, max_rows))
    t_bi = max(1, rows // wh)
    return min(t_bi, n_bi)


def swin_patch_merging(input_feature, input_dimensions, reduction_weight,
                       gamma, beta, *, layer_norm_eps=1e-5,
                       target_rows=2048, vmem_budget_bytes=24 * 1024 * 1024):
    """JAX/Pallas equivalent of TtSwinPatchMerging.forward.

    input_feature   : (1, B, H*W, C)
    input_dimensions: (H, W)
    reduction_weight: (2C, 4C)   (torch nn.Linear layout: (out, in))
    gamma, beta     : (4C,)
    returns         : (1, B, ceil(H/2)*ceil(W/2), 2C)
    """
    height, width = input_dimensions
    _, batch_size, _, num_channels = input_feature.shape
    c = num_channels
    c2 = 2 * c
    c4 = 4 * c

    x = input_feature.reshape(batch_size, height, width, c)

    # maybe_pad (matches fallback_ops.pad semantics: pad H/W up to even)
    pad_h = height % 2
    pad_w = width % 2
    if pad_h or pad_w:
        x = jnp.pad(x, ((0, 0), (0, pad_h), (0, pad_w), (0, 0)))
    hp, wp = height + pad_h, width + pad_w
    hh, wh = hp // 2, wp // 2

    # Free reshape (no data movement): (B, Hp, Wp, C) -> (B*Hh, 2, Wh, 2C)
    #   dim 1 (size 2) = row parity inside a 2x2 patch (h even / h odd)
    #   last dim 2C    = [w-even channels | w-odd channels]
    x_r = x.reshape(batch_size * hh, 2, wh, c2)

    # ---- fold LayerNorm + the patch regroup into the weights (done once) ----
    f32 = jnp.float32
    w_t = jnp.transpose(reduction_weight).astype(f32)            # (4C, 2C)
    gamma_f = gamma.astype(f32)
    beta_f = beta.astype(f32)
    wg = gamma_f[:, None] * w_t                                   # (4C, 2C)
    gsum = gamma_f[None, :] @ w_t                                 # (1, 2C)
    bias = beta_f[None, :] @ w_t                                  # (1, 2C)

    # merged-token channel order is [q0 | q1 | q2 | q3] (q = 2x2 quadrant);
    # the even-row stream carries [q0 | q2], the odd-row stream carries [q1 | q3].
    wg_a = jnp.concatenate([wg[0:c], wg[2 * c:3 * c]], axis=0)    # (2C, 2C)
    wg_b = jnp.concatenate([wg[c:2 * c], wg[3 * c:4 * c]], axis=0)

    # Lane-dense output: pad the output feature dim to a multiple of 128.
    c2p = ((c2 + 127) // 128) * 128
    if c2p != c2:
        padcfg = ((0, 0), (0, c2p - c2))
        wg_a = jnp.pad(wg_a, padcfg)
        wg_b = jnp.pad(wg_b, padcfg)
        gsum = jnp.pad(gsum, padcfg)
        bias = jnp.pad(bias, padcfg)

    compute_dtype = x.dtype            # feed bf16 in and the MXU runs bf16
    wg_a = wg_a.astype(compute_dtype)
    wg_b = wg_b.astype(compute_dtype)

    n_bi = batch_size * hh
    itemsize = jnp.dtype(compute_dtype).itemsize
    t_bi = _choose_row_tile(n_bi, wh, c4, c2p, itemsize,
                            target_rows=target_rows,
                            vmem_budget_bytes=vmem_budget_bytes)
    grid = (pl.cdiv(n_bi, t_bi),)

    kernel = functools.partial(_fused_merge_ln_linear_kernel,
                               eps=float(layer_norm_eps), inv_nc=1.0 / c4)

    out3 = pl.pallas_call(
        kernel,
        out_shape=jax.ShapeDtypeStruct((n_bi, wh, c2p), compute_dtype),
        grid_spec=pltpu.PrefetchScalarGridSpec(
            num_scalar_prefetch=0,
            grid=grid,
            in_specs=[
                pl.BlockSpec((t_bi, 2, wh, c2), lambda i: (i, 0, 0, 0)),  # both parities
                pl.BlockSpec((c2, c2p), lambda i: (0, 0)),                # wg_a
                pl.BlockSpec((c2, c2p), lambda i: (0, 0)),                # wg_b
                pl.BlockSpec((1, c2p), lambda i: (0, 0)),                 # gsum
                pl.BlockSpec((1, c2p), lambda i: (0, 0)),                 # bias
            ],
            out_specs=pl.BlockSpec((t_bi, wh, c2p), lambda i: (i, 0, 0)),
        ),
        compiler_params=pltpu.CompilerParams(
            dimension_semantics=("parallel",),
            vmem_limit_bytes=48 * 1024 * 1024,
        ),
    )(x_r, wg_a, wg_b, gsum, bias)

    out = out3[:, :, :c2] if c2p != c2 else out3
    return out.reshape(1, batch_size, hh * wh, c2)


if __name__ == "__main__":
    # Small but TPU-friendly shapes: B=2, H=W=16, dim (C) = 32
    batch = 2
    height = width = 16
    dim = 32

    key = jax.random.PRNGKey(0)
    k_x, k_w, k_g, k_b = jax.random.split(key, 4)

    # input sequence (1, B, H*W, C)
    x = jax.random.normal(k_x, (1, batch, height * width, dim), dtype=jnp.float32)

    # parameters: nn.Linear(4*dim, 2*dim, bias=False) weight + nn.LayerNorm(4*dim)
    reduction_weight = jax.random.normal(k_w, (2 * dim, 4 * dim), dtype=jnp.float32) * 0.02
    gamma = 1.0 + 0.1 * jax.random.normal(k_g, (4 * dim,), dtype=jnp.float32)
    beta = 0.1 * jax.random.normal(k_b, (4 * dim,), dtype=jnp.float32)

    out = swin_patch_merging(x, (height, width), reduction_weight, gamma, beta)
    out = jax.block_until_ready(out)

    # pure-JAX reference (mirrors the PyTorch module)
    def ref(x):
        xr = x.reshape(batch, height, width, dim)
        x0 = xr[:, 0::2, 0::2, :]
        x1 = xr[:, 1::2, 0::2, :]
        x2 = xr[:, 0::2, 1::2, :]
        x3 = xr[:, 1::2, 1::2, :]
        m = jnp.concatenate([x0, x1, x2, x3], axis=-1)
        m = m.reshape(1, batch, -1, 4 * dim)
        mu = jnp.mean(m, axis=-1, keepdims=True)
        var = jnp.mean((m - mu) ** 2, axis=-1, keepdims=True)
        mn = (m - mu) * jax.lax.rsqrt(var + 1e-5) * gamma + beta
        return jnp.einsum("ubnc,oc->ubno", mn, reduction_weight)

    ref_out = ref(x)
    assert out.shape == (1, batch, (height // 2) * (width // 2), 2 * dim)
    assert jnp.allclose(out, ref_out, atol=1e-3, rtol=1e-3), (
        float(jnp.max(jnp.abs(out - ref_out))))

    print("KERNEL_OK")
</pallas_src>

<mosaic_0001>
module attributes {stable_mosaic.version = 11 : i64} {
  func.func @_fused_merge_ln_linear_kernel(%arg0: i32, %arg1: memref<16x2x8x64xf32, #tpu.memory_space<vmem>>, %arg2: memref<64x128xf32, #tpu.memory_space<vmem>>, %arg3: memref<64x128xf32, #tpu.memory_space<vmem>>, %arg4: memref<1x128xf32, #tpu.memory_space<vmem>>, %arg5: memref<1x128xf32, #tpu.memory_space<vmem>>, %arg6: memref<16x8x128xf32, #tpu.memory_space<vmem>>) attributes {dimension_semantics = [#tpu.dimension_semantics<parallel>], iteration_bounds = array<i64: 1>, scalar_prefetch = 0 : i64, scratch_operands = 0 : i64, tpu.core_type = #tpu.core_type<tc>, window_params = [{transform_indices = @transform_0, window_bounds = array<i64: 16, 2, 8, 64>}, {pipeline_mode = #tpu.pipeline_mode<synchronous>, transform_indices = @transform_1, window_bounds = array<i64: 64, 128>}, {pipeline_mode = #tpu.pipeline_mode<synchronous>, transform_indices = @transform_2, window_bounds = array<i64: 64, 128>}, {pipeline_mode = #tpu.pipeline_mode<synchronous>, transform_indices = @transform_3, window_bounds = array<i64: 1, 128>}, {pipeline_mode = #tpu.pipeline_mode<synchronous>, transform_indices = @transform_4, window_bounds = array<i64: 1, 128>}, {transform_indices = @transform_5, window_bounds = array<i64: 16, 8, 128>}]} {
    %c0 = arith.constant 0 : index
    %c0_0 = arith.constant 0 : index
    %c0_1 = arith.constant 0 : index
    %c0_2 = arith.constant 0 : index
    %0 = vector.load %arg1[%c0, %c0_0, %c0_1, %c0_2] : memref<16x2x8x64xf32, #tpu.memory_space<vmem>>, vector<16x2x8x64xf32>
    %1 = vector.extract_strided_slice %0 {offsets = [0, 0, 0, 0], sizes = [16, 1, 8, 64], strides = [1, 1, 1, 1]} : vector<16x2x8x64xf32> to vector<16x1x8x64xf32>
    %2 = vector.shape_cast %1 : vector<16x1x8x64xf32> to vector<16x8x64xf32>
    %3 = vector.shape_cast %2 : vector<16x8x64xf32> to vector<128x64xf32>
    %4 = vector.extract_strided_slice %0 {offsets = [0, 1, 0, 0], sizes = [16, 1, 8, 64], strides = [1, 1, 1, 1]} : vector<16x2x8x64xf32> to vector<16x1x8x64xf32>
    %5 = vector.shape_cast %4 : vector<16x1x8x64xf32> to vector<16x8x64xf32>
    %6 = vector.shape_cast %5 : vector<16x8x64xf32> to vector<128x64xf32>
    %cst = arith.constant dense<0.000000e+00> : vector<128xf32>
    %7 = vector.multi_reduction <add>, %3, %cst [1] : vector<128x64xf32> to vector<128xf32>
    %8 = vector.shape_cast %7 : vector<128xf32> to vector<128x1xf32>
    %cst_3 = arith.constant dense<0.000000e+00> : vector<128xf32>
    %9 = vector.multi_reduction <add>, %6, %cst_3 [1] : vector<128x64xf32> to vector<128xf32>
    %10 = vector.shape_cast %9 : vector<128xf32> to vector<128x1xf32>
    %11 = arith.addf %8, %10 : vector<128x1xf32>
    %12 = arith.mulf %3, %3 : vector<128x64xf32>
    %cst_4 = arith.constant dense<0.000000e+00> : vector<128xf32>
    %13 = vector.multi_reduction <add>, %12, %cst_4 [1] : vector<128x64xf32> to vector<128xf32>
    %14 = vector.shape_cast %13 : vector<128xf32> to vector<128x1xf32>
    %15 = arith.mulf %6, %6 : vector<128x64xf32>
    %cst_5 = arith.constant dense<0.000000e+00> : vector<128xf32>
    %16 = vector.multi_reduction <add>, %15, %cst_5 [1] : vector<128x64xf32> to vector<128xf32>
    %17 = vector.shape_cast %16 : vector<128xf32> to vector<128x1xf32>
    %18 = arith.addf %14, %17 : vector<128x1xf32>
    %cst_6 = arith.constant 7.812500e-03 : f32
    %19 = vector.broadcast %cst_6 : f32 to vector<128x1xf32>
    %20 = arith.mulf %11, %19 : vector<128x1xf32>
    %cst_7 = arith.constant 7.812500e-03 : f32
    %21 = vector.broadcast %cst_7 : f32 to vector<128x1xf32>
    %22 = arith.mulf %18, %21 : vector<128x1xf32>
    %23 = arith.mulf %20, %20 : vector<128x1xf32>
    %24 = arith.subf %22, %23 : vector<128x1xf32>
    %cst_8 = arith.constant 9.99999974E-6 : f32
    %25 = vector.broadcast %cst_8 : f32 to vector<128x1xf32>
    %26 = arith.addf %24, %25 : vector<128x1xf32>
    %27 = math.rsqrt %26 : vector<128x1xf32>
    %c0_9 = arith.constant 0 : index
    %c0_10 = arith.constant 0 : index
    %28 = vector.load %arg2[%c0_9, %c0_10] : memref<64x128xf32, #tpu.memory_space<vmem>>, vector<64x128xf32>
    %cst_11 = arith.constant dense<0.000000e+00> : vector<128x128xf32>
    %29 = tpu.matmul %3, %28, %cst_11 {dimension_numbers = #tpu.dot_dimension_numbers<[1], [0], [0], [1], [0, 0, 1, 1], [], []>} : vector<128x64xf32>, vector<64x128xf32>, vector<128x128xf32> -> vector<128x128xf32>
    %c0_12 = arith.constant 0 : index
    %c0_13 = arith.constant 0 : index
    %30 = vector.load %arg3[%c0_12, %c0_13] : memref<64x128xf32, #tpu.memory_space<vmem>>, vector<64x128xf32>
    %cst_14 = arith.constant dense<0.000000e+00> : vector<128x128xf32>
    %31 = tpu.matmul %6, %30, %cst_14 {dimension_numbers = #tpu.dot_dimension_numbers<[1], [0], [0], [1], [0, 0, 1, 1], [], []>} : vector<128x64xf32>, vector<64x128xf32>, vector<128x128xf32> -> vector<128x128xf32>
    %32 = arith.addf %29, %31 : vector<128x128xf32>
    %c0_15 = arith.constant 0 : index
    %c0_16 = arith.constant 0 : index
    %33 = vector.load %arg4[%c0_15, %c0_16] : memref<1x128xf32, #tpu.memory_space<vmem>>, vector<1x128xf32>
    %34 = vector.broadcast %20 : vector<128x1xf32> to vector<128x128xf32>
    %35 = vector.broadcast %33 : vector<1x128xf32> to vector<128x128xf32>
    %36 = arith.mulf %34, %35 : vector<128x128xf32>
    %37 = arith.subf %32, %36 : vector<128x128xf32>
    %38 = vector.broadcast %27 : vector<128x1xf32> to vector<128x128xf32>
    %39 = arith.mulf %38, %37 : vector<128x128xf32>
    %c0_17 = arith.constant 0 : index
    %c0_18 = arith.constant 0 : index
    %40 = vector.load %arg5[%c0_17, %c0_18] : memref<1x128xf32, #tpu.memory_space<vmem>>, vector<1x128xf32>
    %41 = vector.broadcast %40 : vector<1x128xf32> to vector<128x128xf32>
    %42 = arith.addf %39, %41 : vector<128x128xf32>
    %43 = vector.shape_cast %42 : vector<128x128xf32> to vector<16x8x128xf32>
    %c0_19 = arith.constant 0 : index
    %c0_20 = arith.constant 0 : index
    %c0_21 = arith.constant 0 : index
    %44 = vector.load %arg6[%c0_19, %c0_20, %c0_21] : memref<16x8x128xf32, #tpu.memory_space<vmem>>, vector<16x8x128xf32>
    tpu.vector_store %arg6[%c0_19, %c0_20, %c0_21], %43 {strides = array<i32>} : memref<16x8x128xf32, #tpu.memory_space<vmem>>, vector<16x8x128xf32>,
    return
  }
  func.func @transform_0(%arg0: i32) -> (i32, i32, i32, i32) {
    %c0_i32 = arith.constant 0 : i32
    %c0_i32_0 = arith.constant 0 : i32
    %c0_i32_1 = arith.constant 0 : i32
    %c0_i32_2 = arith.constant 0 : i32
    return %arg0, %c0_i32, %c0_i32_0, %c0_i32_1 : i32, i32, i32, i32
  }
  func.func @transform_1(%arg0: i32) -> (i32, i32) {
    %c0_i32 = arith.constant 0 : i32
    %c0_i32_0 = arith.constant 0 : i32
    %c0_i32_1 = arith.constant 0 : i32
    return %c0_i32, %c0_i32_0 : i32, i32
  }
  func.func @transform_2(%arg0: i32) -> (i32, i32) {
    %c0_i32 = arith.constant 0 : i32
    %c0_i32_0 = arith.constant 0 : i32
    %c0_i32_1 = arith.constant 0 : i32
    return %c0_i32, %c0_i32_0 : i32, i32
  }
  func.func @transform_3(%arg0: i32) -> (i32, i32) {
    %c0_i32 = arith.constant 0 : i32
    %c0_i32_0 = arith.constant 0 : i32
    %c0_i32_1 = arith.constant 0 : i32
    return %c0_i32, %c0_i32_0 : i32, i32
  }
  func.func @transform_4(%arg0: i32) -> (i32, i32) {
    %c0_i32 = arith.constant 0 : i32
    %c0_i32_0 = arith.constant 0 : i32
    %c0_i32_1 = arith.constant 0 : i32
    return %c0_i32, %c0_i32_0 : i32, i32
  }
  func.func @transform_5(%arg0: i32) -> (i32, i32, i32) {
    %c0_i32 = arith.constant 0 : i32
    %c0_i32_0 = arith.constant 0 : i32
    %c0_i32_1 = arith.constant 0 : i32
    return %arg0, %c0_i32, %c0_i32_0 : i32, i32, i32
  }
}

</mosaic_0001>

<bundles_post_ra>
// kernel: tpu_custom_call.1
= control target key start
LH: loop header
LB: loop body
LE: loop exit
PB: predicated region body
PF: predicated region fallthrough
CT: control target
= control target key end

     0   :  { %10 = vsyncpa [#allocation3], 0  ;;  %s1953_s0 = inlined_call_operand.hbm [shape: f32[16,2,8,64], index: 0, kind: input, shape index: {}]   ;;  %s1954_s1 = inlined_call_operand.hbm [shape: f32[64,128], index: 1, kind: input, shape index: {}]   ;;  %s1955_s2 = inlined_call_operand.hbm [shape: f32[64,128], index: 2, kind: input, shape index: {}]   ;;  %s1956_s3 = inlined_call_operand.vmem [shape: f32[1,128], index: 3, kind: input, shape index: {}]   ;;  %s1957_s4 = inlined_call_operand.vmem [shape: f32[1,128], index: 4, kind: input, shape index: {}]   ;;  %s1958_s5 = inlined_call_operand.hbm [shape: f32[16,8,128], index: 5, kind: output, shape index: {}]  }
   0x1   :  { %11 = vsyncpa [#allocation6], 0 }
   0x2   :  { %12 = vsyncpa [#allocation4], 0  ;;  %s1247_s18 = smov [#allocation5]   ;;  %s1248_s20 = smov [#allocation2]  }
   0x3   :  { %s30_s19 = sshll.u32 %s1247_s18, 4  ;;  %s18_s21 = sshll.u32 %s1248_s20, 4  ;;  %s31_s19 = int_to_ptr.vmem [resolvable:$true] %s30_s19  ;;  %s19_s21 = int_to_ptr.vmem [resolvable:$true] %s18_s21 }
   0x4   :  { %s1169_s22 = scalar_lea.vmem %s31_s19, 1024  ;;  %p1174_p1 = scmp.lt.s32.totalorder %s31_s19, %s31_s19 }
   0x5   :  { %p1170_p0 = scmp.ne.s32.totalorder %s31_s19, %s1169_s22  ;;  %p1175_p2 = scmp.lt.s32.totalorder %s1169_s22, %s1169_s22 }
   0x7   :  { %p1176_p3 = por %p1175_p2, %p1174_p1 }
   0x9   :  { %p1177_p4 = pnand %p1176_p3, %p1170_p0 }
   0xb   :  { %1180 = shalt.err (!%p1177_p4)
}
   0xc   :  { %s1249_s23 = smov 128   ;;  %s1250_s24 = smov 8  }
   0xd   :  { %36 = dma.hbm_to_vmem [thread:$0]  %s1954_s1, 1024, %s31_s19, [#allocation6], %s1249_s23, %s1249_s23, %s1250_s24  }
   0xe   :  { %s1189_s27 = scalar_lea.vmem %s19_s21, 4096  ;;  %p1194_p6 = scmp.lt.s32.totalorder %s19_s21, %s19_s21 }
   0xf   :  { %p1190_p5 = scmp.ne.s32.totalorder %s19_s21, %s1189_s27  ;;  %p1195_p7 = scmp.lt.s32.totalorder %s1189_s27, %s1189_s27 }
  0x11   :  { %p1196_p8 = por %p1195_p7, %p1194_p6 }
  0x13   :  { %p1197_p9 = pnand %p1196_p8, %p1190_p5 }
  0x15   :  { %1200 = shalt.err (!%p1197_p9)
}
  0x16   :  { %24 = dma.hbm_to_vmem [thread:$0]  %s1953_s0, 4096, %s19_s21, [#allocation3], %s1249_s23, %s1249_s23, %s1250_s24  }
  0x17   :  { %s1251_s30 = smov [#allocation7]  }
  0x18   :  { %s42_s6 = sshll.u32 %s1251_s30, 4  ;;  %s43_s6 = int_to_ptr.vmem [resolvable:$true] %s42_s6 }
  0x19   :  { %s1209_s7 = scalar_lea.vmem %s43_s6, 1024  ;;  %p1214_p11 = scmp.lt.s32.totalorder %s43_s6, %s43_s6 }
  0x1a   :  { %p1210_p10 = scmp.ne.s32.totalorder %s43_s6, %s1209_s7  ;;  %p1215_p12 = scmp.lt.s32.totalorder %s1209_s7, %s1209_s7 }
  0x1c   :  { %p1216_p13 = por %p1215_p12, %p1214_p11 }
  0x1e   :  { %p1217_p0 = pnand %p1216_p13, %p1210_p10 }
  0x20   :  { %1220 = shalt.err (!%p1217_p0)
}
  0x21   :  { %48 = dma.hbm_to_vmem [thread:$0]  %s1955_s2, 1024, %s43_s6, [#allocation6], %s1249_s23, %s1249_s23, %s1250_s24  }
  0x22   :  { %1241 = dma.done.wait [#allocation3], 4096  }
  0x23   :  { %1242 = vsyncadd [#allocation3], 4294963200 }
  0x24   :  { %1243 = dma.done.wait [#allocation6], 2048  }
  0x25   :  { %1244 = vsyncadd [#allocation6], 4294965248  ;;  %vm94_vm0 = vcmask 523264   ;;  %v462_v0 = vld [vmem:[#allocation7 + $0x38] sm:$0xff]  ;;  %v1301_v2 = vld [vmem:[#allocation2 + $0x20] sm:$0xff] }
  0x26   :  { %v454_v1 = vld [vmem:[#allocation5 + $0x38] sm:$0xff]  ;;  %1043 = vmatprep.subr.mxu0 %v462_v0  ;;  %v101_v3 = vsel %vm94_vm0, %v1301_v2, 0.0  ;;  %v1305_v4 = vld [vmem:[#allocation2] sm:$0xff]  ;;  %v461_v5 = vld [vmem:[#allocation7 + $0x30] sm:$0xff]  ;;  %v209_v7 = vmul.f32 %v1301_v2, %v1301_v2 }
  0x27   :  { %1083 = vmatprep.subr.mxu1 %v454_v1  ;;  %v453_v6 = vld [vmem:[#allocation5 + $0x30] sm:$0xff]  ;;  %1044 = vmatpush3.msra.mxu0 %v462_v0  ;;  %v95_v8 = vsel %vm94_vm0, %v1305_v4, 0.0  ;;  %v207_v10 = vmul.f32 %v1305_v4, %v1305_v4  ;;  %v460_v11 = vld [vmem:[#allocation7 + $0x28] sm:$0xff]  ;;  %v1331_v20 = vld [vmem:[#allocation2 + $0x40] sm:$0xff] }
  0x28   :  { %1084 = vmatpush3.msra.mxu1 %v454_v1  ;;  %v1311_v9 = vld [vmem:[#allocation2 + $0x30] sm:$0xff]  ;;  %102 = vadd.xlane.f32.xlu1 %v101_v3  ;;  %v452_v12 = vld [vmem:[#allocation5 + $0x28] sm:$0xff]  ;;  %v1320_v15 = vsel %vm94_vm0, %v209_v7, 0.0  ;;  %v459_v23 = vld [vmem:[#allocation7 + $0x20] sm:$0xff]  ;;  %v211_v25 = vmul.f32 %v1331_v20, %v1331_v20  ;;  %v107_v31 = vsel %vm94_vm0, %v1331_v20, 0.0 }
  0x29   :  { %96 = vadd.xlane.f32.xlu0 %v95_v8  ;;  %v1315_v13 = vld [vmem:[#allocation2 + $0x10] sm:$0xff]  ;;  %v210_v14 = vmul.f32 %v1311_v9, %v1311_v9  ;;  %1045 = vmatprep.subr.mxu0 %v461_v5  ;;  %v1325_v17 = vsel %vm94_vm0, %v207_v10, 0.0  ;;  %v104_v18 = vsel %vm94_vm0, %v1311_v9, 0.0  ;;  %v451_v24 = vld [vmem:[#allocation5 + $0x20] sm:$0xff]  ;;  %v458_v27 = vld [vmem:[#allocation7 + $0x18] sm:$0xff] }
  0x2a   :  { %1085 = vmatprep.subr.mxu1 %v453_v6  ;;  %v1322_v16 = vld [vmem:[#allocation2 + $0x50] sm:$0xff]  ;;  %1046 = vmatpush3.msra.mxu0 %v461_v5  ;;  %v98_v19 = vsel %vm94_vm0, %v1315_v13, 0.0  ;;  %v450_v28 = vld [vmem:[#allocation5 + $0x18] sm:$0xff]  ;;  %v1344_v29 = vsel %vm94_vm0, %v211_v25, 0.0  ;;  %v1352_v35 = vld [vmem:[#allocation2 + $0x60] sm:$0xff] }
  0x2b   :  { %1086 = vmatpush3.msra.mxu1 %v453_v6  ;;  %v1334_v21 = vsel %vm94_vm0, %v210_v14, 0.0  ;;  %v212_v22 = vmul.f32 %v1322_v16, %v1322_v16  ;;  %1047 = vmatprep.subr.mxu0 %v460_v11  ;;  %v110_v30 = vsel %vm94_vm0, %v1322_v16, 0.0  ;;  %v457_v32 = vld [vmem:[#allocation7 + $0x10] sm:$0xff]  ;;  %v456_v36 = vld [vmem:[#allocation7 + $0x8] sm:$0xff]  ;;  %v113_v39 = vsel %vm94_vm0, %v1352_v35, 0.0  ;;  %v455_v40 = vld [vmem:[#allocation7] sm:$0xff] }
  0x2c   :  { %1087 = vmatprep.subr.mxu1 %v452_v12  ;;  %1048 = vmatpush3.msra.mxu0 %v460_v11  ;;  %v449_v33 = vld [vmem:[#allocation5 + $0x10] sm:$0xff]  ;;  %v448_v37 = vld [vmem:[#allocation5 + $0x8] sm:$0xff]  ;;  %v447_v41 = vld [vmem:[#allocation5] sm:$0xff] }
  0x2d   :  { %1088 = vmatpush3.msra.mxu1 %v452_v12  ;;  %v1341_v26 = vsel %vm94_vm0, %v212_v22, 0.0  ;;  %105 = vadd.xlane.f32.xlu1 %v104_v18  ;;  %v1350_v34 = vld [vmem:[#allocation2 + $0x70] sm:$0xff]  ;;  %v1360_v43 = vld [vmem:[#allocation2 + $0x80] sm:$0xff]  ;;  %v1362_v44 = vld [vmem:[#allocation2 + $0x8] sm:$0xff] }
  0x2e   :  { %99 = vadd.xlane.f32.xlu0 %v98_v19  ;;  %1049 = vmatprep.subr.mxu0 %v459_v23  ;;  %v116_v38 = vsel %vm94_vm0, %v1350_v34, 0.0  ;;  %v1358_v42 = vld [vmem:[#allocation2 + $0x90] sm:$0xff]  ;;  %v1366_v46 = vld [vmem:[#allocation2 + $0x18] sm:$0xff]  ;;  %v1368_v47 = vld [vmem:[#allocation2 + $0xa0] sm:$0xff]  ;;  %v119_v49 = vsel %vm94_vm0, %v1360_v43, 0.0  ;;  %v271_v54 = vmul.f32 %v1362_v44, %v1362_v44 }
  0x2f   :  { %1089 = vmatprep.subr.mxu1 %v451_v24  ;;  %1050 = vmatpush3.msra.mxu0 %v459_v23  ;;  %v1364_v45 = vld [vmem:[#allocation2 + $0xb0] sm:$0xff]  ;;  %v122_v48 = vsel %vm94_vm0, %v1358_v42, 0.0  ;;  %v1374_v50 = vld [vmem:[#allocation2 + $0x28] sm:$0xff]  ;;  %v1376_v51 = vld [vmem:[#allocation2 + $0x38] sm:$0xff]  ;;  %v272_v53 = vmul.f32 %v1366_v46, %v1366_v46  ;;  %v125_v60 = vsel %vm94_vm0, %v1368_v47, 0.0 }
  0x30   :  { %1090 = vmatpush3.msra.mxu1 %v451_v24  ;;  %1051 = vmatprep.subr.mxu0 %v458_v27  ;;  %v1378_v52 = vld [vmem:[#allocation2 + $0x58] sm:$0xff]  ;;  %v128_v55 = vsel %vm94_vm0, %v1364_v45, 0.0  ;;  %v1388_v56 = vld [vmem:[#allocation2 + $0x48] sm:$0xff]  ;;  %v274_v57 = vmul.f32 %v1376_v51, %v1376_v51  ;;  %v273_v58 = vmul.f32 %v1374_v50, %v1374_v50  ;;  %v1406_v63 = vsel %vm94_vm0, %v271_v54, 0.0 }
  0x31   :  { %1091 = vmatprep.subr.mxu1 %v450_v28  ;;  %1052 = vmatpush3.msra.mxu0 %v458_v27  ;;  %v276_v59 = vmul.f32 %v1378_v52, %v1378_v52  ;;  %v1400_v61 = vld [vmem:[#allocation2 + $0x78] sm:$0xff]  ;;  %v1403_v62 = vsel %vm94_vm0, %v272_v53, 0.0  ;;  %v275_v0 = vmul.f32 %v1388_v56, %v1388_v56  ;;  %v1414_v1 = vld [vmem:[#allocation2 + $0x68] sm:$0xff] }
  0x32   :  { %1092 = vmatpush3.msra.mxu1 %v450_v28  ;;  %111 = vadd.xlane.f32.xlu1 %v110_v30  ;;  %v1416_v3 = vld [vmem:[#allocation2 + $0x88] sm:$0xff]  ;;  %v1421_v5 = vsel %vm94_vm0, %v274_v57, 0.0  ;;  %v1424_v6 = vsel %vm94_vm0, %v273_v58, 0.0  ;;  %v278_v8 = vmul.f32 %v1400_v61, %v1400_v61  ;;  %v1433_v11 = vld [vmem:[#allocation2 + $0xb8] sm:$0xff]  ;;  %v277_v18 = vmul.f32 %v1414_v1, %v1414_v1  ;;  %v1461_v30 = vld [vmem:[#allocation2 + $0xd0] sm:$0xff] }
  0x33   :  { %108 = vadd.xlane.f32.xlu0 %v107_v31  ;;  %1053 = vmatprep.subr.mxu0 %v457_v32  ;;  %v1427_v7 = vsel %vm94_vm0, %v276_v59, 0.0  ;;  %v1431_v10 = vld [vmem:[#allocation2 + $0xa8] sm:$0xff]  ;;  %v1435_v12 = vld [vmem:[#allocation2 + $0xd8] sm:$0xff]  ;;  %v1438_v14 = vsel %vm94_vm0, %v275_v0, 0.0  ;;  %v279_v22 = vmul.f32 %v1416_v3, %v1416_v3  ;;  %v282_v25 = vmul.f32 %v1433_v11, %v1433_v11  ;;  %v1463_v31 = vld [vmem:[#allocation2 + $0xc0] sm:$0xff] }
  0x34   :  { %1093 = vmatprep.subr.mxu1 %v449_v33  ;;  %1054 = vmatpush3.msra.mxu0 %v457_v32  ;;  %v1450_v23 = vld [vmem:[#allocation2 + $0xc8] sm:$0xff]  ;;  %v1453_v24 = vsel %vm94_vm0, %v278_v8, 0.0  ;;  %v281_v27 = vmul.f32 %v1431_v10, %v1431_v10  ;;  %v284_v28 = vmul.f32 %v1435_v12, %v1435_v12  ;;  %v1465_v32 = vld [vmem:[#allocation2 + $0xf8] sm:$0xff]  ;;  %v134_v53 = vsel %vm94_vm0, %v1461_v30, 0.0  ;;  %v1511_v57 = vld [vmem:[#allocation2 + $0xf0] sm:$0xff] }
  0x35   :  { %1094 = vmatpush3.msra.mxu1 %v449_v33  ;;  %1055 = vmatprep.subr.mxu0 %v456_v36  ;;  %v131_v54 = vsel %vm94_vm0, %v1463_v31, 0.0  ;;  %v1513_v58 = vld [vmem:[#allocation2 + $0xe0] sm:$0xff]  ;;  %v143_v0 = vsel %vm94_vm0, %v1362_v44, 0.0 }
  0x36   :  { %1095 = vmatprep.subr.mxu1 %v448_v37  ;;  %1056 = vmatpush3.msra.mxu0 %v456_v36  ;;  %v1474_v36 = vsel %vm94_vm0, %v279_v22, 0.0  ;;  %v179_v22 = vsel %vm94_vm0, %v1450_v23, 0.0 }
  0x37   :  { %1096 = vmatpush3.msra.mxu1 %v448_v37  ;;  %117 = vadd.xlane.f32.xlu1 %v116_v38  ;;  %v283_v37 = vmul.f32 %v1450_v23, %v1450_v23  ;;  %v1482_v38 = vld [vmem:[#allocation2 + $0xe8] sm:$0xff] }
  0x38   :  { %114 = vadd.xlane.f32.xlu0 %v113_v39  ;;  %1057 = vmatprep.subr.mxu0 %v455_v40  ;;  %v1485_v39 = vsel %vm94_vm0, %v282_v25, 0.0 }
  0x39   :  { %1097 = vmatprep.subr.mxu1 %v447_v41  ;;  %1058 = vmatpush3.msra.mxu0 %v455_v40  ;;  %v1488_v40 = vsel %vm94_vm0, %v281_v27, 0.0  ;;  %v219_v27 = vmul.f32 %v1463_v31, %v1463_v31 }
  0x3a   :  { %1059 = vmatprep.mubr.msk.f32.mxu0 %vm94_vm0, %v1362_v44  ;;  %1098 = vmatpush3.msra.mxu1 %v447_v41  ;;  %v1491_v41 = vsel %vm94_vm0, %v284_v28, 0.0  ;;  %v149_v44 = vsel %vm94_vm0, %v1374_v50, 0.0 }
  0x3b   :  { %1099 = vmatprep.mubr.msk.f32.mxu1 %vm94_vm0, %v1305_v4  ;;  %1060 = vmatmul.mubr.msk.f32.vlgmr.msra.gmra.mxu0 %vm94_vm0, %v1366_v46  ;;  %v1418_v4 = vld [vmem:[#allocation2 + $0x98] sm:$0xff] }
  0x3c   :  { %1100 = vmatmul.mubr.msk.f32.vlgmr.msra.gmra.mxu1 %vm94_vm0, %v1315_v13  ;;  %123 = vadd.xlane.f32.xlu1 %v122_v48  ;;  %v280_v19 = vmul.f32 %v1418_v4, %v1418_v4  ;;  %v286_v48 = vmul.f32 %v1465_v32, %v1465_v32  ;;  %v170_v8 = vsel %vm94_vm0, %v1418_v4, 0.0 }
  0x3d   :  { %120 = vadd.xlane.f32.xlu0 %v119_v49  ;;  %1062 = vmatprep.mubr.msk.f32.mxu0 %vm94_vm0, %v1374_v50  ;;  %v1496_v49 = vsel %vm94_vm0, %v283_v37, 0.0  ;;  %v155_v50 = vsel %vm94_vm0, %v1388_v56, 0.0 }
  0x3e   :  { %1102 = vmatprep.mubr.msk.f32.mxu1 %vm94_vm0, %v1301_v2  ;;  %v1468_v2 = vsel %vm94_vm0, %v277_v18, 0.0  ;;  %v1471_v33 = vsel %vm94_vm0, %v280_v19, 0.0  ;;  %v167_v18 = vsel %vm94_vm0, %v1416_v3, 0.0  ;;  %v182_v19 = vsel %vm94_vm0, %v1435_v12, 0.0 }
  0x3f   :  { %1063 = vmatmul.mubr.msk.f32.gmra.mxu0 %vm94_vm0, %v1376_v51 }
  0x40   :  { %1103 = vmatmul.mubr.msk.f32.gmra.mxu1 %vm94_vm0, %v1311_v9  ;;  %129 = vadd.xlane.f32.xlu1 %v128_v55  ;;  %v285_v9 = vmul.f32 %v1482_v38, %v1482_v38  ;;  %v1509_v55 = vsel %vm94_vm0, %v286_v48, 0.0 }
  0x41   :  { %126 = vadd.xlane.f32.xlu0 %v125_v60  ;;  %1065 = vmatprep.mubr.msk.f32.mxu0 %vm94_vm0, %v1388_v56  ;;  %v137_v60 = vsel %vm94_vm0, %v1513_v58, 0.0  ;;  %v161_v56 = vsel %vm94_vm0, %v1414_v1, 0.0 }
  0x42   :  { %1105 = vmatprep.mubr.msk.f32.mxu1 %vm94_vm0, %v1331_v20  ;;  %v1516_v59 = vsel %vm94_vm0, %v285_v9, 0.0  ;;  %v140_v20 = vsel %vm94_vm0, %v1511_v57, 0.0 }
  0x43   :  { %1066 = vmatmul.mubr.msk.f32.gmra.mxu0 %vm94_vm0, %v1378_v52 }
  0x44   :  { %1106 = vmatmul.mubr.msk.f32.gmra.mxu1 %vm94_vm0, %v1322_v16  ;;  %135 = vadd.xlane.f32.xlu1 %v134_v53  ;;  %v146_v16 = vsel %vm94_vm0, %v1366_v46, 0.0  ;;  %v152_v46 = vsel %vm94_vm0, %v1376_v51, 0.0  ;;  %v158_v51 = vsel %vm94_vm0, %v1378_v52, 0.0  ;;  %v164_v52 = vsel %vm94_vm0, %v1400_v61, 0.0 }
  0x45   :  { %132 = vadd.xlane.f32.xlu0 %v131_v54  ;;  %1068 = vmatprep.mubr.msk.f32.mxu0 %vm94_vm0, %v1414_v1  ;;  %v173_v1 = vsel %vm94_vm0, %v1431_v10, 0.0 }
  0x46   :  { %1108 = vmatprep.mubr.msk.f32.mxu1 %vm94_vm0, %v1352_v35 }
  0x47   :  { %1069 = vmatmul.mubr.msk.f32.gmra.mxu0 %vm94_vm0, %v1400_v61  ;;  %v176_v61 = vsel %vm94_vm0, %v1433_v11, 0.0 }
  0x48   :  { %1109 = vmatmul.mubr.msk.f32.gmra.mxu1 %vm94_vm0, %v1350_v34  ;;  %141 = vadd.xlane.f32.xlu1 %v140_v20 }
  0x49   :  { %138 = vadd.xlane.f32.xlu0 %v137_v60  ;;  %1071 = vmatprep.mubr.msk.f32.mxu0 %vm94_vm0, %v1416_v3  ;;  %v188_v3 = vsel %vm94_vm0, %v1465_v32, 0.0 }
  0x4a   :  { %1111 = vmatprep.mubr.msk.f32.mxu1 %vm94_vm0, %v1360_v43 }
  0x4b   :  { %1072 = vmatmul.mubr.msk.f32.gmra.mxu0 %vm94_vm0, %v1418_v4  ;;  %v185_v4 = vsel %vm94_vm0, %v1482_v38, 0.0 }
  0x4c   :  { %1112 = vmatmul.mubr.msk.f32.gmra.mxu1 %vm94_vm0, %v1358_v42  ;;  %147 = vadd.xlane.f32.xlu1 %v146_v16 }
  0x4d   :  { %144 = vadd.xlane.f32.xlu0 %v143_v0  ;;  %1074 = vmatprep.mubr.msk.f32.mxu0 %vm94_vm0, %v1431_v10 }
  0x4e   :  { %1114 = vmatprep.mubr.msk.f32.mxu1 %vm94_vm0, %v1368_v47 }
  0x4f   :  { %1075 = vmatmul.mubr.msk.f32.gmra.mxu0 %vm94_vm0, %v1433_v11  ;;  %v208_v11 = vmul.f32 %v1315_v13, %v1315_v13 }
  0x50   :  { %1115 = vmatmul.mubr.msk.f32.gmra.mxu1 %vm94_vm0, %v1364_v45  ;;  %153 = vadd.xlane.f32.xlu1 %v152_v46 }
  0x51   :  { %150 = vadd.xlane.f32.xlu0 %v149_v44  ;;  %1077 = vmatprep.mubr.msk.f32.mxu0 %vm94_vm0, %v1450_v23  ;;  %v226_v10 = vsel %vm94_vm0, %v208_v11, 0.0  ;;  %v213_v23 = vmul.f32 %v1352_v35, %v1352_v35 }
  0x52   :  { %1117 = vmatprep.mubr.msk.f32.mxu1 %vm94_vm0, %v1463_v31 }
  0x53   :  { %1078 = vmatmul.mubr.msk.f32.gmra.mxu0 %vm94_vm0, %v1435_v12  ;;  %v214_v12 = vmul.f32 %v1350_v34, %v1350_v34  ;;  %v241_v25 = vsel %vm94_vm0, %v213_v23, 0.0 }
  0x54   :  { %1118 = vmatmul.mubr.msk.f32.gmra.mxu1 %vm94_vm0, %v1461_v30  ;;  %159 = vadd.xlane.f32.xlu1 %v158_v51 }
  0x55   :  { %156 = vadd.xlane.f32.xlu0 %v155_v50  ;;  %1080 = vmatprep.mubr.msk.f32.mxu0 %vm94_vm0, %v1482_v38  ;;  %v244_v13 = vsel %vm94_vm0, %v214_v12, 0.0 }
  0x56   :  { %1120 = vmatprep.mubr.msk.f32.mxu1 %vm94_vm0, %v1513_v58 }
  0x57   :  { %1081 = vmatmul.mubr.msk.f32.gmra.mxu0 %vm94_vm0, %v1465_v32  ;;  %v221_v32 = vmul.f32 %v1513_v58, %v1513_v58 }
  0x58   :  { %1121 = vmatmul.mubr.msk.f32.gmra.mxu1 %vm94_vm0, %v1511_v57  ;;  %165 = vadd.xlane.f32.xlu1 %v164_v52 }
  0x59   :  { %162 = vadd.xlane.f32.xlu0 %v161_v56 }
  0x5c   :  { %171 = vadd.xlane.f32.xlu1 %v170_v8 }
  0x5d   :  { %168 = vadd.xlane.f32.xlu0 %v167_v18 }
  0x60   :  { %177 = vadd.xlane.f32.xlu1 %v176_v61 }
  0x61   :  { %174 = vadd.xlane.f32.xlu0 %v173_v1 }
  0x64   :  { %183 = vadd.xlane.f32.xlu1 %v182_v19 }
  0x65   :  { %180 = vadd.xlane.f32.xlu0 %v179_v22 }
  0x68   :  { %189 = vadd.xlane.f32.xlu1 %v188_v3 }
  0x69   :  { %186 = vadd.xlane.f32.xlu0 %v185_v4 }
  0x6c   :  { %227 = vadd.xlane.f32.xlu1 %v226_v10 }
  0x6d   :  { %224 = vadd.xlane.f32.xlu0 %v1325_v17  ;;  %v216_v17 = vmul.f32 %v1358_v42, %v1358_v42 }
  0x70   :  { %233 = vadd.xlane.f32.xlu1 %v1334_v21  ;;  %v250_v21 = vsel %vm94_vm0, %v216_v17, 0.0 }
  0x71   :  { %230 = vadd.xlane.f32.xlu0 %v1320_v15  ;;  %v215_v15 = vmul.f32 %v1360_v43, %v1360_v43  ;;  %v220_v43 = vmul.f32 %v1461_v30, %v1461_v30  ;;  %v265_v30 = vsel %vm94_vm0, %v221_v32, 0.0 }
  0x73   :  { %v247_v34 = vsel %vm94_vm0, %v215_v15, 0.0  ;;  %v262_v28 = vsel %vm94_vm0, %v220_v43, 0.0 }
  0x74   :  { %239 = vadd.xlane.f32.xlu1 %v1341_v26  ;;  %v218_v26 = vmul.f32 %v1364_v45, %v1364_v45  ;;  %v259_v45 = vsel %vm94_vm0, %v219_v27, 0.0 }
  0x75   :  { %236 = vadd.xlane.f32.xlu0 %v1344_v29  ;;  %v217_v29 = vmul.f32 %v1368_v47, %v1368_v47  ;;  %v222_v47 = vmul.f32 %v1511_v57, %v1511_v57 }
  0x76   :  { %v256_v35 = vsel %vm94_vm0, %v218_v26, 0.0 }
  0x77   :  { %v253_v42 = vsel %vm94_vm0, %v217_v29, 0.0  ;;  %v268_v37 = vsel %vm94_vm0, %v222_v47, 0.0 }
  0x78   :  { %245 = vadd.xlane.f32.xlu1 %v244_v13 }
  0x79   :  { %242 = vadd.xlane.f32.xlu0 %v241_v25 }
  0x7c   :  { %251 = vadd.xlane.f32.xlu1 %v250_v21 }
  0x7d   :  { %248 = vadd.xlane.f32.xlu0 %v247_v34 }
  0x80   :  { %257 = vadd.xlane.f32.xlu1 %v256_v35 }
  0x81   :  { %254 = vadd.xlane.f32.xlu0 %v253_v42 }
  0x84   :  { %263 = vadd.xlane.f32.xlu1 %v262_v28 }
  0x85   :  { %260 = vadd.xlane.f32.xlu0 %v259_v45  ;;  %v1717_v45 = vld [vmem:[%s1956_s3] ss:$0 sm:$0xff] }
  0x86   :  { %1962 = vst [vmem:[#allocation12_spill] sm:$0xff] %v1717_v45 }
  0x88   :  { %269 = vadd.xlane.f32.xlu1 %v268_v37 }
  0x89   :  { %266 = vadd.xlane.f32.xlu0 %v265_v30 }
  0x8c   :  { %291 = vadd.xlane.f32.xlu1 %v1403_v62 }
  0x8d   :  { %288 = vadd.xlane.f32.xlu0 %v1406_v63 }
  0x90   :  { %297 = vadd.xlane.f32.xlu1 %v1421_v5 }
  0x91   :  { %294 = vadd.xlane.f32.xlu0 %v1424_v6 }
  0x94   :  { %303 = vadd.xlane.f32.xlu1 %v1427_v7 }
  0x95   :  { %300 = vadd.xlane.f32.xlu0 %v1438_v14 }
  0x98   :  { %309 = vadd.xlane.f32.xlu1 %v1453_v24 }
  0x99   :  { %306 = vadd.xlane.f32.xlu0 %v1468_v2 }
  0x9c   :  { %315 = vadd.xlane.f32.xlu1 %v1471_v33 }
  0x9d   :  { %312 = vadd.xlane.f32.xlu0 %v1474_v36 }
  0xa0   :  { %321 = vadd.xlane.f32.xlu1 %v1485_v39 }
  0xa1   :  { %318 = vadd.xlane.f32.xlu0 %v1488_v40 }
  0xa4   :  { %327 = vadd.xlane.f32.xlu1 %v1491_v41 }
  0xa5   :  { %324 = vadd.xlane.f32.xlu0 %v1496_v49 }
  0xa8   :  { %333 = vadd.xlane.f32.xlu1 %v1509_v55 }
  0xa9   :  { %330 = vadd.xlane.f32.xlu0 %v1516_v59 }
  0xb1   :  { %v103_v62 = vpop.xlane.xlu1 %102 }
  0xb2   :  { %v97_v63 = vpop.xlane.xlu0 %96 }
  0xb6   :  { %v106_v5 = vpop.xlane.xlu1 %105 }
  0xb7   :  { %v100_v6 = vpop.xlane.xlu0 %99 }
  0xbb   :  { %v112_v7 = vpop.xlane.xlu1 %111 }
  0xbc   :  { %v109_v14 = vpop.xlane.xlu0 %108 }
  0xc0   :  { %v118_v24 = vpop.xlane.xlu1 %117 }
  0xc1   :  { %v115_v31 = vpop.xlane.xlu0 %114 }
  0xc5   :  { %v124_v2 = vpop.xlane.xlu1 %123 }
  0xc6   :  { %v1652_v33 = vpop.xlane.xlu0 %120 }
  0xc9   :  { %v1654_v36 = vpop.xlane.xlu1 %129 }
  0xca   :  { %v1656_v38 = vpop.xlane.xlu0 %126 }
  0xcd   :  { %v1658_v39 = vpop.xlane.xlu1 %135 }
  0xce   :  { %v1660_v40 = vpop.xlane.xlu0 %132 }
  0xd1   :  { %v1662_v41 = vpop.xlane.xlu1 %141 }
  0xd2   :  { %v1664_v48 = vpop.xlane.xlu0 %138 }
  0xd5   :  { %v148_v49 = vpop.xlane.xlu1 %147 }
  0xd6   :  { %v145_v9 = vpop.xlane.xlu0 %144  ;;  %v192_v17 = vadd.f32 %v148_v49, %v100_v6 }
  0xd7   :  { %v191_v15 = vadd.f32 %v145_v9, %v97_v63 }
  0xd8   :  { %v352_v27 = vmul.f32 0.0078125, %v192_v17 }
  0xd9   :  { %v154_v53 = vpop.xlane.xlu1 %153  ;;  %v351_v47 = vmul.f32 0.0078125, %v191_v15 }
  0xda   :  { %v151_v54 = vpop.xlane.xlu0 %150  ;;  %v194_v21 = vadd.f32 %v154_v53, %v106_v5  ;;  %v1728_v53 = vmul.f32 %v1717_v45, %v352_v27 }
  0xdb   :  { %v193_v29 = vadd.f32 %v151_v54, %v103_v62 }
  0xdc   :  { %v354_v32 = vmul.f32 0.0078125, %v194_v21 }
  0xdd   :  { %v160_v55 = vpop.xlane.xlu1 %159  ;;  %v353_v62 = vmul.f32 0.0078125, %v193_v29 }
  0xde   :  { %v157_v57 = vpop.xlane.xlu0 %156  ;;  %v196_v42 = vadd.f32 %v160_v55, %v112_v7 }
  0xdf   :  { %v195_v28 = vadd.f32 %v157_v57, %v109_v14  ;;  %v384_v14 = vmul.f32 %v352_v27, %v352_v27  ;;  %v1732_v57 = vmul.f32 %v1717_v45, %v351_v47  ;;  %v1742_v15 = vmul.f32 %v1717_v45, %v353_v62 }
  0xe0   :  { %v356_v7 = vmul.f32 0.0078125, %v196_v42 }
  0xe1   :  { %v166_v58 = vpop.xlane.xlu1 %165  ;;  %v355_v54 = vmul.f32 0.0078125, %v195_v28 }
  0xe2   :  { %v163_v59 = vpop.xlane.xlu0 %162  ;;  %v198_v37 = vadd.f32 %v166_v58, %v118_v24  ;;  %v383_v24 = vmul.f32 %v351_v47, %v351_v47  ;;  %v386_v58 = vmul.f32 %v354_v32, %v354_v32 }
  0xe3   :  { %v197_v5 = vadd.f32 %v163_v59, %v115_v31  ;;  %v1751_v47 = vmul.f32 %v355_v54, %v355_v54 }
  0xe4   :  { %v358_v17 = vmul.f32 0.0078125, %v198_v37 }
  0xe5   :  { %v172_v20 = vpop.xlane.xlu1 %171  ;;  %v357_v21 = vmul.f32 0.0078125, %v197_v5 }
  0xe6   :  { %v169_v60 = vpop.xlane.xlu0 %168  ;;  %v200_v49 = vadd.f32 %v172_v20, %v124_v2  ;;  %v1739_v2 = vmul.f32 %v1717_v45, %v354_v32  ;;  %v385_v20 = vmul.f32 %v353_v62, %v353_v62  ;;  %v1754_v32 = vmul.f32 %v1717_v45, %v355_v54 }
  0xe7   :  { %v199_v55 = vadd.f32 %v169_v60, %v1652_v33  ;;  %v1744_v33 = vmul.f32 %v356_v7, %v356_v7  ;;  %v1747_v60 = vmul.f32 %v1717_v45, %v356_v7  ;;  %v1761_v5 = vmul.f32 %v1717_v45, %v358_v17 }
  0xe8   :  { %v1749_v42 = vmul.f32 0.0078125, %v200_v49  ;;  %v1772_v54 = vmul.f32 %v1717_v45, %v357_v21 }
  0xe9   :  { %v1666_v16 = vpop.xlane.xlu1 %177  ;;  %v1756_v37 = vmul.f32 0.0078125, %v199_v55  ;;  %1966 = vst [vmem:[#allocation16_spill] sm:$0xff] %v1761_v5 }
  0xea   :  { %v1668_v0 = vpop.xlane.xlu0 %174  ;;  %1965 = vst [vmem:[#allocation15_spill] sm:$0xff] %v1749_v42  ;;  %v202_v7 = vadd.f32 %v1666_v16, %v1654_v36 }
  0xec   :  { %v1790_v45 = vmul.f32 0.0078125, %v202_v7 }
  0xed   :  { %v1670_v46 = vpop.xlane.xlu1 %183 }
  0xee   :  { %v1672_v44 = vpop.xlane.xlu0 %180  ;;  %v204_v36 = vadd.f32 %v1670_v46, %v1658_v39 }
  0xf1   :  { %v1674_v51 = vpop.xlane.xlu1 %189 }
  0xf2   :  { %v1676_v50 = vpop.xlane.xlu0 %186 }
  0xf5   :  { %v228_v52 = vpop.xlane.xlu1 %227 }
  0xf6   :  { %v225_v56 = vpop.xlane.xlu0 %224 }
  0xf9   :  { %v1678_v8 = vpop.xlane.xlu1 %233 }
  0xfa   :  { %v1680_v18 = vpop.xlane.xlu0 %230 }
  0xfb   :  { %v1690_v3 = vpop.f32.mrf.mxu0 }
  0xfc   :  { %v1692_v4 = vpop.f32.mrf.mxu1 }
  0xfd   :  { %v1682_v61 = vpop.xlane.xlu1 %239  ;;  %v1698_v12 = vpop.f32.mrf.mxu0 }
  0xfe   :  { %v1684_v1 = vpop.xlane.xlu0 %236  ;;  %v1700_v23 = vpop.f32.mrf.mxu1 }
  0xff   :  { %v1706_v34 = vpop.f32.mrf.mxu0 }
 0x100   :  { %v1708_v26 = vpop.f32.mrf.mxu1 }
 0x101   :  { %v1686_v19 = vpop.xlane.xlu1 %245  ;;  %v1719_v30 = vpop.f32.mrf.mxu0 }
 0x102   :  { %v1688_v22 = vpop.xlane.xlu0 %242  ;;  %v1721_v63 = vpop.f32.mrf.mxu1 }
 0x103   :  { %v1734_v31 = vpop.f32.mrf.mxu0 }
 0x104   :  { %v1736_v59 = vpop.f32.mrf.mxu1 }
 0x105   :  { %v1694_v11 = vpop.xlane.xlu1 %251  ;;  %v1765_v49 = vpop.f32.mrf.mxu0 }
 0x106   :  { %v1696_v10 = vpop.xlane.xlu0 %248 }
 0x107   :  { %v1794_v39 = vpop.f32.mrf.mxu0 }
 0x109   :  { %v1702_v13 = vpop.xlane.xlu1 %257 }
 0x10a   :  { %v1704_v25 = vpop.xlane.xlu0 %254 }
 0x10d   :  { %v1710_v35 = vpop.xlane.xlu1 %263 }
 0x10e   :  { %v1712_v43 = vpop.xlane.xlu0 %260 }
 0x111   :  { %v1723_v6 = vpop.xlane.xlu1 %269 }
 0x112   :  { %1963 = vst [vmem:[#allocation13_spill] sm:$0xff] %v1723_v6  ;;  %v1725_v9 = vpop.xlane.xlu0 %266  ;;  %v1769_v6 = vmul.f32 %v357_v21, %v357_v21  ;;  %v1785_v21 = vmul.f32 %v1756_v37, %v1756_v37 }
 0x113   :  { %1964 = vst [vmem:[#allocation14_spill] sm:$0xff] %v1725_v9  ;;  %v1758_v9 = vmul.f32 %v358_v17, %v358_v17  ;;  %v1778_v17 = vmul.f32 %v1749_v42, %v1749_v42  ;;  %v206_v42 = vadd.f32 %v1674_v51, %v1662_v41 }
 0x115   :  { %v292_v29 = vpop.xlane.xlu1 %291 }
 0x116   :  { %v336_v27 = vadd.f32 %v292_v29, %v228_v52  ;;  %v289_v28 = vpop.xlane.xlu0 %288  ;;  %v1767_v52 = vpop.f32.mrf.mxu1 }
 0x117   :  { %v335_v62 = vadd.f32 %v289_v28, %v225_v56  ;;  %v201_v56 = vadd.f32 %v1668_v0, %v1656_v38  ;;  %v203_v38 = vadd.f32 %v1672_v44, %v1660_v40 }
 0x118   :  { %v368_v29 = vmul.f32 0.0078125, %v336_v27  ;;  %v1796_v46 = vpop.f32.mrf.mxu1 }
 0x119   :  { %v367_v55 = vmul.f32 0.0078125, %v335_v62  ;;  %v298_v28 = vpop.xlane.xlu1 %297  ;;  %v1805_v7 = vmul.f32 0.0078125, %v203_v38 }
 0x11a   :  { %v400_v16 = vsub.f32 %v368_v29, %v384_v14  ;;  %v338_v27 = vadd.f32 %v298_v28, %v1678_v8  ;;  %v295_v5 = vpop.xlane.xlu0 %294  ;;  %v1798_v29 = vmul.f32 0.0078125, %v201_v56  ;;  %v205_v28 = vadd.f32 %v1676_v50, %v1664_v48  ;;  %v1814_v50 = vpop.f32.mrf.mxu0 }
 0x11b   :  { %v399_v0 = vsub.f32 %v367_v55, %v383_v24  ;;  %v337_v62 = vadd.f32 %v295_v5, %v1680_v18  ;;  %v1802_v18 = vmul.f32 0.0078125, %v204_v36  ;;  %v1812_v48 = vmul.f32 0.0078125, %v206_v42  ;;  %v1816_v36 = vpop.f32.mrf.mxu1 }
 0x11c   :  { %v416_v8 = vadd.f32 1e-05, %v400_v16  ;;  %v370_v14 = vmul.f32 0.0078125, %v338_v27  ;;  %v1810_v16 = vmul.f32 %v1790_v45, %v1790_v45  ;;  %v1822_v38 = vmul.f32 0.0078125, %v205_v28 }
 0x11d   :  { %v415_v40 = vadd.f32 1e-05, %v399_v0  ;;  %v369_v44 = vmul.f32 0.0078125, %v337_v62  ;;  %v304_v24 = vpop.xlane.xlu1 %303  ;;  %v1826_v62 = vmul.f32 %v1802_v18, %v1802_v18 }
 0x11e   :  { %1129 = vrsqrt.f32 %v416_v8  ;;  %v402_v5 = vsub.f32 %v370_v14, %v386_v58  ;;  %v340_v41 = vadd.f32 %v304_v24, %v1682_v61  ;;  %v301_v51 = vpop.xlane.xlu0 %300  ;;  %v1820_v61 = vmul.f32 %v1798_v29, %v1798_v29 }
 0x11f   :  { %1131 = vrsqrt.f32 %v415_v40  ;;  %v401_v55 = vsub.f32 %v369_v44, %v385_v20  ;;  %v339_v56 = vadd.f32 %v301_v51, %v1684_v1  ;;  %v1832_v40 = vmul.f32 %v1805_v7, %v1805_v7 }
 0x120   :  { %v418_v58 = vadd.f32 1e-05, %v402_v5  ;;  %v372_v27 = vmul.f32 0.0078125, %v340_v41  ;;  %v1838_v24 = vmul.f32 %v1812_v48, %v1812_v48  ;;  %v776_v5 = vadd.f32 %v1692_v4, %v1690_v3 }
 0x121   :  { %v417_v20 = vadd.f32 1e-05, %v401_v55  ;;  %v371_v1 = vmul.f32 0.0078125, %v339_v56  ;;  %v310_v0 = vpop.xlane.xlu1 %309  ;;  %v1848_v55 = vmul.f32 %v1822_v38, %v1822_v38 }
 0x122   :  { %1133 = vrsqrt.f32 %v418_v58  ;;  %v404_v42 = vsub.f32 %v372_v27, %v1744_v33  ;;  %v342_v8 = vadd.f32 %v310_v0, %v1686_v19  ;;  %v307_v14 = vpop.xlane.xlu0 %306  ;;  %v1842_v33 = vpop.f32.mrf.mxu0  ;;  %v786_v27 = vadd.f32 %v1708_v26, %v1706_v34 }
 0x123   :  { %1135 = vrsqrt.f32 %v417_v20  ;;  %v403_v28 = vsub.f32 %v371_v1, %v1751_v47  ;;  %v341_v44 = vadd.f32 %v307_v14, %v1688_v22  ;;  %v1844_v19 = vpop.f32.mrf.mxu1  ;;  %v771_v22 = vadd.f32 %v1700_v23, %v1698_v12 }
 0x124   :  { %v420_v41 = vadd.f32 1e-05, %v404_v42  ;;  %v374_v51 = vmul.f32 0.0078125, %v342_v8  ;;  %v781_v1 = vadd.f32 %v1721_v63, %v1719_v30  ;;  %v873_v23 = vsub.f32 %v776_v5, %v1728_v53  ;;  %v1865_v34 = vpop.f32.mrf.mxu0 }
 0x125   :  { %v419_v47 = vadd.f32 1e-05, %v403_v28  ;;  %v373_v56 = vmul.f32 0.0078125, %v341_v44  ;;  %v316_v58 = vpop.xlane.xlu1 %315  ;;  %v1863_v42 = vadd.f32 %v1736_v59, %v1734_v31  ;;  %v1867_v26 = vpop.f32.mrf.mxu1  ;;  %v872_v8 = vsub.f32 %v771_v22, %v1732_v57  ;;  %v1881_v57 = vld [vmem:[%s1957_s4] ss:$0 sm:$0xff]  ;;  %s1252_s4 = smov [#allocation8]  }
 0x126   :  { %1137 = vrsqrt.f32 %v420_v41  ;;  %v406_v3 = vsub.f32 %v374_v51, %v1758_v9  ;;  %v344_v4 = vadd.f32 %v316_v58, %v1694_v11  ;;  %v313_v20 = vpop.xlane.xlu0 %312  ;;  %v1872_v30 = vadd.f32 %v1767_v52, %v1765_v49  ;;  %v1887_v5 = vpop.f32.mrf.mxu0  ;;  %s948_s10 = sshll.u32 %s1252_s4, 4  ;;  %s949_s10 = int_to_ptr.vmem [resolvable:$true] %s948_s10 }
 0x127   :  { %1139 = vrsqrt.f32 %v419_v47  ;;  %v405_v0 = vsub.f32 %v373_v56, %v1769_v6  ;;  %v343_v12 = vadd.f32 %v313_v20, %v1696_v10  ;;  %v875_v53 = vsub.f32 %v786_v27, %v1739_v2  ;;  %s1221_s11 = scalar_lea.vmem %s949_s10, 2048  ;;  %p1226_p2 = scmp.lt.s32.totalorder %s949_s10, %s949_s10 }
 0x128   :  { %v422_v11 = vadd.f32 1e-05, %v406_v3  ;;  %v376_v9 = vmul.f32 0.0078125, %v344_v4  ;;  %v874_v44 = vsub.f32 %v781_v1, %v1742_v15  ;;  %v876_v22 = vsub.f32 %v1872_v30, %v1754_v32  ;;  %p1222_p1 = scmp.ne.s32.totalorder %s949_s10, %s1221_s11  ;;  %p1227_p3 = scmp.lt.s32.totalorder %s1221_s11, %s1221_s11 }
 0x129   :  { %v421_v63 = vadd.f32 1e-05, %v405_v0  ;;  %v375_v10 = vmul.f32 0.0078125, %v343_v12  ;;  %v322_v6 = vpop.xlane.xlu1 %321  ;;  %v806_v12 = vadd.f32 %v1796_v46, %v1794_v39  ;;  %v1967_v39 = vld [vmem:[#allocation13_spill] sm:$0xff] }
 0x12a   :  { %1141 = vrsqrt.f32 %v422_v11  ;;  %v408_v31 = vsub.f32 %v376_v9, %v1778_v17  ;;  %v346_v59 = vadd.f32 %v322_v6, %v1702_v13  ;;  %v319_v14 = vpop.xlane.xlu0 %318  ;;  %v877_v17 = vsub.f32 %v1863_v42, %v1747_v60  ;;  %v1889_v13 = vpop.f32.mrf.mxu1  ;;  %p1228_p4 = por %p1227_p3, %p1226_p2 }
 0x12b   :  { %v1130_v28 = vpop.eup %1129  ;;  %1143 = vrsqrt.f32 %v421_v63  ;;  %v407_v49 = vsub.f32 %v375_v10, %v1785_v21  ;;  %v345_v52 = vadd.f32 %v319_v14, %v1704_v25 }
 0x12c   :  { %v1132_v2 = vpop.eup %1131  ;;  %v889_v41 = vmul.f32 %v1130_v28, %v873_v23  ;;  %v424_v15 = vadd.f32 1e-05, %v408_v31  ;;  %v378_v51 = vmul.f32 0.0078125, %v346_v59  ;;  %v627_v23 = vpop.f32.mrf.mxu0  ;;  %v1969_v28 = vld [vmem:[#allocation16_spill] sm:$0xff]  ;;  %p1229_p5 = pnand %p1228_p4, %p1222_p1 }
 0x12d   :  { %v888_v47 = vmul.f32 %v1132_v2, %v872_v8  ;;  %v423_v56 = vadd.f32 1e-05, %v407_v49  ;;  %v377_v58 = vmul.f32 0.0078125, %v345_v52  ;;  %v328_v21 = vpop.xlane.xlu1 %327  ;;  %v820_v42 = vpop.f32.mrf.mxu1 }
 0x12e   :  { %v912_v25 = vadd.f32 %v1881_v57, %v889_v41  ;;  %1145 = vrsqrt.f32 %v424_v15  ;;  %v410_v27 = vsub.f32 %v378_v51, %v1810_v16  ;;  %v348_v60 = vadd.f32 %v328_v21, %v1710_v35  ;;  %v325_v3 = vpop.xlane.xlu0 %324  ;;  %v1079_v49 = vpop.f32.mrf.mxu0 }
 0x12f   :  { %v1134_v4 = vpop.eup %1133  ;;  %v911_v20 = vadd.f32 %v1881_v57, %v888_v47  ;;  %1147 = vrsqrt.f32 %v423_v56  ;;  %v409_v1 = vsub.f32 %v377_v58, %v1820_v61  ;;  %v347_v32 = vadd.f32 %v325_v3, %v1712_v43  ;;  %v1119_v52 = vpop.f32.mrf.mxu1  ;;  %v1971_v3 = vld [vmem:[#allocation12_spill] sm:$0xff] }
 0x130   :  { %v1136_v0 = vpop.eup %1135  ;;  %928 = vst [vmem:[#allocation8 + $0x8] sm:$0xff] %v912_v25  ;;  %v891_v11 = vmul.f32 %v1134_v4, %v875_v53  ;;  %v426_v16 = vadd.f32 1e-05, %v410_v27  ;;  %v380_v9 = vmul.f32 0.0078125, %v348_v60  ;;  %v801_v35 = vadd.f32 %v1816_v36, %v1814_v50  ;;  %v1968_v50 = vld [vmem:[#allocation14_spill] sm:$0xff]  ;;  %v1970_v60 = vld [vmem:[#allocation15_spill] sm:$0xff] }
 0x131   :  { %927 = vst [vmem:[#allocation8] sm:$0xff] %v911_v20  ;;  %v890_v8 = vmul.f32 %v1136_v0, %v874_v44  ;;  %v425_v30 = vadd.f32 1e-05, %v409_v1  ;;  %v379_v63 = vmul.f32 0.0078125, %v347_v32  ;;  %v334_v61 = vpop.xlane.xlu1 %333  ;;  %v879_v44 = vsub.f32 %v806_v12, %v1969_v28  ;;  %v637_v20 = vpop.f32.mrf.mxu0 }
 0x132   :  { %v914_v43 = vadd.f32 %v1881_v57, %v891_v11  ;;  %1149 = vrsqrt.f32 %v426_v16  ;;  %v412_v10 = vsub.f32 %v380_v9, %v1826_v62  ;;  %v350_v46 = vadd.f32 %v334_v61, %v1967_v39  ;;  %v331_v6 = vpop.xlane.xlu0 %330 }
 0x133   :  { %v1138_v31 = vpop.eup %1137  ;;  %v913_v53 = vadd.f32 %v1881_v57, %v890_v8  ;;  %1151 = vrsqrt.f32 %v425_v30  ;;  %v411_v59 = vsub.f32 %v379_v63, %v1832_v40  ;;  %v349_v36 = vadd.f32 %v331_v6, %v1968_v50  ;;  %v1082_v8 = vpop.f32.mrf.mxu0 }
 0x134   :  { %v1140_v14 = vpop.eup %1139  ;;  %930 = vst [vmem:[#allocation8 + $0x18] sm:$0xff] %v914_v43  ;;  %v893_v2 = vmul.f32 %v1138_v31, %v877_v17  ;;  %v428_v41 = vadd.f32 1e-05, %v412_v10  ;;  %v382_v62 = vmul.f32 0.0078125, %v350_v46  ;;  %v878_v15 = vsub.f32 %v801_v35, %v1772_v54 }
 0x135   :  { %929 = vst [vmem:[#allocation8 + $0x10] sm:$0xff] %v913_v53  ;;  %v892_v51 = vmul.f32 %v1140_v14, %v876_v22  ;;  %v427_v47 = vadd.f32 1e-05, %v411_v59  ;;  %v381_v56 = vmul.f32 0.0078125, %v349_v36  ;;  %v816_v40 = vadd.f32 %v1844_v19, %v1842_v33  ;;  %v830_v33 = vpop.f32.mrf.mxu1  ;;  %v647_v31 = vpop.f32.mrf.mxu0 }
 0x136   :  { %v916_v58 = vadd.f32 %v1881_v57, %v893_v2  ;;  %1153 = vrsqrt.f32 %v428_v41  ;;  %v414_v21 = vsub.f32 %v382_v62, %v1838_v24  ;;  %v811_v17 = vadd.f32 %v1867_v26, %v1865_v34 }
 0x137   :  { %v1142_v25 = vpop.eup %1141  ;;  %v915_v27 = vadd.f32 %v1881_v57, %v892_v51  ;;  %1155 = vrsqrt.f32 %v427_v47  ;;  %v413_v54 = vsub.f32 %v381_v56, %v1848_v55  ;;  %v865_v4 = vmul.f32 %v1971_v3, %v1970_v60  ;;  %v1122_v30 = vpop.f32.mrf.mxu1 }
 0x138   :  { %v1144_v22 = vpop.eup %1143  ;;  %932 = vst [vmem:[#allocation8 + $0x28] sm:$0xff] %v916_v58  ;;  %v895_v19 = vmul.f32 %v1142_v25, %v879_v44  ;;  %v430_v1 = vadd.f32 1e-05, %v414_v21  ;;  %v864_v24 = vmul.f32 %v1971_v3, %v1756_v37  ;;  %v826_v0 = vadd.f32 %v1889_v13, %v1887_v5 }
 0x139   :  { %931 = vst [vmem:[#allocation8 + $0x20] sm:$0xff] %v915_v27  ;;  %v894_v32 = vmul.f32 %v1144_v22, %v878_v15  ;;  %v429_v34 = vadd.f32 1e-05, %v413_v54  ;;  %v881_v26 = vsub.f32 %v816_v40, %v865_v4  ;;  %v821_v16 = vadd.f32 %v820_v42, %v627_v23  ;;  %v840_v53 = vpop.f32.mrf.mxu1 }
 0x13a   :  { %v918_v55 = vadd.f32 %v1881_v57, %v895_v19  ;;  %1157 = vrsqrt.f32 %v430_v1  ;;  %v880_v11 = vsub.f32 %v811_v17, %v864_v24  ;;  %v867_v37 = vmul.f32 %v1971_v3, %v1790_v45 }
 0x13b   :  { %v1146_v12 = vpop.eup %1145  ;;  %v917_v9 = vadd.f32 %v1881_v57, %v894_v32  ;;  %1159 = vrsqrt.f32 %v429_v34  ;;  %v866_v5 = vmul.f32 %v1971_v3, %v1798_v29  ;;  %v836_v43 = vadd.f32 %v1119_v52, %v1079_v49 }
 0x13c   :  { %v1148_v35 = vpop.eup %1147  ;;  %934 = vst [vmem:[#allocation8 + $0x38] sm:$0xff] %v918_v55  ;;  %v897_v63 = vmul.f32 %v1146_v12, %v881_v26  ;;  %v883_v61 = vsub.f32 %v826_v0, %v867_v37  ;;  %v831_v39 = vadd.f32 %v830_v33, %v637_v20  ;;  %v869_v45 = vmul.f32 %v1971_v3, %v1802_v18 }
 0x13d   :  { %933 = vst [vmem:[#allocation8 + $0x30] sm:$0xff] %v917_v9  ;;  %v896_v13 = vmul.f32 %v1148_v35, %v880_v11  ;;  %v882_v10 = vsub.f32 %v821_v16, %v866_v5  ;;  %v868_v29 = vmul.f32 %v1971_v3, %v1805_v7  ;;  %v846_v14 = vadd.f32 %v1122_v30, %v1082_v8 }
 0x13e   :  { %v920_v23 = vadd.f32 %v1881_v57, %v897_v63  ;;  %v885_v36 = vsub.f32 %v836_v43, %v869_v45  ;;  %v841_v52 = vadd.f32 %v840_v53, %v647_v31  ;;  %v871_v18 = vmul.f32 %v1971_v3, %v1812_v48 }
 0x13f   :  { %v1150_v42 = vpop.eup %1149  ;;  %v919_v46 = vadd.f32 %v1881_v57, %v896_v13  ;;  %v884_v49 = vsub.f32 %v831_v39, %v868_v29  ;;  %v870_v7 = vmul.f32 %v1971_v3, %v1822_v38 }
 0x140   :  { %v1152_v6 = vpop.eup %1151  ;;  %936 = vst [vmem:[#allocation8 + $0x48] sm:$0xff] %v920_v23  ;;  %v899_v59 = vmul.f32 %v1150_v42, %v883_v61  ;;  %v887_v51 = vsub.f32 %v846_v14, %v871_v18 }
 0x141   :  { %935 = vst [vmem:[#allocation8 + $0x40] sm:$0xff] %v919_v46  ;;  %v898_v50 = vmul.f32 %v1152_v6, %v882_v10  ;;  %v886_v40 = vsub.f32 %v841_v52, %v870_v7 }
 0x142   :  { %v922_v28 = vadd.f32 %v1881_v57, %v899_v59 }
 0x143   :  { %v1154_v44 = vpop.eup %1153  ;;  %v921_v2 = vadd.f32 %v1881_v57, %v898_v50 }
 0x144   :  { %v1156_v41 = vpop.eup %1155  ;;  %938 = vst [vmem:[#allocation8 + $0x58] sm:$0xff] %v922_v28  ;;  %v901_v62 = vmul.f32 %v1154_v44, %v885_v36 }
 0x145   :  { %937 = vst [vmem:[#allocation8 + $0x50] sm:$0xff] %v921_v2  ;;  %v900_v15 = vmul.f32 %v1156_v41, %v884_v49 }
 0x146   :  { %v924_v47 = vadd.f32 %v1881_v57, %v901_v62 }
 0x147   :  { %v1158_v56 = vpop.eup %1157  ;;  %v923_v58 = vadd.f32 %v1881_v57, %v900_v15 }
 0x148   :  { %v1160_v21 = vpop.eup %1159  ;;  %940 = vst [vmem:[#allocation8 + $0x68] sm:$0xff] %v924_v47  ;;  %v903_v25 = vmul.f32 %v1158_v56, %v887_v51 }
 0x149   :  { %939 = vst [vmem:[#allocation8 + $0x60] sm:$0xff] %v923_v58  ;;  %v902_v48 = vmul.f32 %v1160_v21, %v886_v40 }
 0x14a   :  { %v926_v17 = vadd.f32 %v1881_v57, %v903_v25 }
 0x14b   :  { %v925_v38 = vadd.f32 %v1881_v57, %v902_v48 }
 0x14c   :  { %942 = vst [vmem:[#allocation8 + $0x78] sm:$0xff] %v926_v17 }
 0x14d   :  { %941 = vst [vmem:[#allocation8 + $0x70] sm:$0xff] %v925_v38 }
 0x14e   :  { %1232 = shalt.err (!%p1229_p5)
}
 0x14f   :  { %954 = dma.vmem_to_hbm [thread:$0]  %s949_s10, 2048, %s1958_s5, [#allocation4], %s1249_s23, %s1249_s23, %s1250_s24  }
 0x150   :  { %1245 = dma.done.wait [#allocation4], 2048  }
 0x151   :  { %1246 = vsyncadd [#allocation4], 4294965248 }
 0x152   :  { %958 = vsyncpa [#allocation3], 1 }
 0x153   :  { %959 = vsyncpa [#allocation6], 1 }
 0x154   :  { %960 = vsyncpa [#allocation4], 1 }

</bundles_post_ra>
